<compile_context>
chip_gen: v7x
topology: tpu7x:2x2x1
jax: 0.10.0
libtpu: 0.0.40
codegen_flags: <defaults>
</compile_context>

<pallas_src>
import jax
import jax.numpy as jnp
from jax.experimental import pallas as pl
from jax.experimental.pallas import tpu as pltpu

EPS = 1e-6
_MiB = 1024 * 1024


def _vmem_capacity_bytes():
    try:
        info = pltpu.get_tpu_info()
        cap = getattr(info, "vmem_capacity_bytes", None)
        if cap:
            return int(cap)
    except Exception:
        pass
    return 64 * _MiB  # conservative (v7x-sized) fallback


# --------------------------- adaLN modulation kernel ---------------------------
def _ada_mod_kernel(vec_ref, w_ref, b_ref, o_ref):
    # vec_ref: (B, H)   w_ref: (tn, H) native layout/dtype   b_ref: (1, tn) f32-castable
    # o_ref:   (B, tn) f32
    v = vec_ref[...].astype(jnp.float32)
    v = v * jax.nn.sigmoid(v)                                   # SiLU in f32
    w = w_ref[...]                                              # no f32 copy of the weight tile
    y = jax.lax.dot_general(v.astype(w.dtype), w,
                            (((1,), (1,)), ((), ())),           # v @ W_ada^T on the MXU
                            preferred_element_type=jnp.float32)
    o_ref[...] = y + b_ref[...].astype(jnp.float32)


def _ada_modulation(vec, w_ada, b_ada, vmem_limit):
    """SiLU(vec) @ W_ada^T + b_ada -> (B, 2H) f32.  W_ada stays in native (2H, H) layout."""
    B, H = vec.shape
    N = w_ada.shape[0]                                          # 2H
    w_isz = jnp.dtype(w_ada.dtype).itemsize
    if N <= 2048:
        tn = N
    else:
        tn = (24 * _MiB) // (2 * H * w_isz)                     # double-buffered weight-tile budget
        tn = max(128, min(2048, (tn // 128) * 128))
    return pl.pallas_call(
        _ada_mod_kernel,
        out_shape=jax.ShapeDtypeStruct((B, N), jnp.float32),
        grid_spec=pltpu.PrefetchScalarGridSpec(
            num_scalar_prefetch=0,
            grid=(pl.cdiv(N, tn),),
            in_specs=[
                pl.BlockSpec((B, H), lambda n: (0, 0)),
                pl.BlockSpec((tn, H), lambda n: (n, 0)),        # rows of native (2H, H) weight
                pl.BlockSpec((1, tn), lambda n: (0, n)),
            ],
            out_specs=pl.BlockSpec((B, tn), lambda n: (0, n)),
        ),
        compiler_params=pltpu.CompilerParams(
            dimension_semantics=("parallel",),
            vmem_limit_bytes=vmem_limit,
        ),
    )(vec, w_ada, b_ada.reshape(1, N))


# ------------------- fused LayerNorm + modulate + linear kernel -----------------
def _last_layer_kernel(x_ref, shift_ref, scale1_ref, w_ref, b_ref, o_ref):
    # x_ref: (1, tm, H)   shift/scale1: (1, 1, H) f32   w_ref: (H, O) native dtype
    # b_ref: (1, O)       o_ref: (1, tm, O)
    x = x_ref[0].astype(jnp.float32)                            # single f32 read of the tile
    mu = jnp.mean(x, axis=-1, keepdims=True)
    ex2 = jnp.mean(x * x, axis=-1, keepdims=True)
    var = jnp.maximum(ex2 - mu * mu, 0.0)                       # one-pass LN statistics
    inv = jax.lax.rsqrt(var + EPS)
    w = w_ref[...]                                              # native (bf16/f32) MXU operand
    mod = ((x - mu) * inv * scale1_ref[0] + shift_ref[0]).astype(w.dtype)
    y = jnp.dot(mod, w, preferred_element_type=jnp.float32)     # f32 accumulation
    o_ref[0] = (y + b_ref[...].astype(jnp.float32)).astype(o_ref.dtype)


def _pick_row_tile(seq, hidden, out_dim, x_isz, w_isz, budget_bytes):
    """Largest row tile (multiple of the sublane quantum, <=1024) fitting the budget."""
    sublane = {4: 8, 2: 16, 1: 32}.get(x_isz, 8)
    if seq <= sublane:
        return seq                                              # full (legal) block
    # resident / double-buffered blocks that do not scale with tm
    fixed = 2 * hidden * out_dim * w_isz + 4 * out_dim * 4 + 8 * hidden * 4
    # per row: x/out double-buffered tiles + f32 x copy + f32 mod + matmul-input cast + f32 y
    per_row = (2 * hidden * x_isz + 2 * out_dim * x_isz
               + 2 * hidden * 4 + hidden * w_isz + out_dim * 4)
    tm = max(sublane, (budget_bytes - fixed) // per_row)
    tm = min(tm, 1024)
    tm = (tm // sublane) * sublane
    seq_padded = ((seq + sublane - 1) // sublane) * sublane
    return max(sublane, min(tm, seq_padded))


def last_layer_forward(x, vec, w_ada, b_ada, w_lin, b_lin):
    """Pallas implementation of flux LastLayer.forward (modulation_dims=None).

    x:     (B, S, H)
    vec:   (B, H) or (B, 1, H)
    w_ada: (2H, H), b_ada: (2H,)     -- adaLN_modulation Linear (PyTorch layout)
    w_lin: (O, H),  b_lin: (O,)      -- final Linear, O = patch_size**2 * out_channels
    """
    # TODO(synk): the modulation_dims != None path of apply_mod (per-slice in-place
    # modulation) is not implemented; only the default broadcast path is supported.
    B, S, H = x.shape
    if vec.ndim == 3:
        vec = vec[:, 0, :]
    O = w_lin.shape[0]

    cap = _vmem_capacity_bytes()
    budget = min(40 * _MiB, (cap * 45) // 100)       # ~28.8 MiB working set on v7x, 40 MiB on v5e/v6e
    vmem_limit = min(64 * _MiB, (cap * 65) // 100)   # ~41.6 MiB limit on v7x, 64 MiB elsewhere

    # adaLN: shift / (1 + scale), each (B, 1, H) f32, computed once per batch.
    ss = _ada_modulation(vec, w_ada, b_ada, vmem_limit)          # (B, 2H) f32
    shift = ss[:, :H].reshape(B, 1, H)
    scale1 = ss[:, H:].reshape(B, 1, H) + 1.0                    # fold the "+1" here (tiny)

    x_isz = jnp.dtype(x.dtype).itemsize
    w_isz = jnp.dtype(w_lin.dtype).itemsize
    tm = _pick_row_tile(S, H, O, x_isz, w_isz, budget)
    n_seq = pl.cdiv(S, tm)

    w_lin_t = jnp.transpose(w_lin)                               # (H, O): tiny one-time layout prep
    b_lin2 = b_lin.reshape(1, O)

    # TODO(synk): if O < 128 lanes, a lane-dense packed out_spec (e.g. viewing output as
    # (B, S*O)) would avoid masked partial stores; skipped since O >= 128 in the target config.
    return pl.pallas_call(
        _last_layer_kernel,
        out_shape=jax.ShapeDtypeStruct((B, S, O), x.dtype),
        grid_spec=pltpu.PrefetchScalarGridSpec(
            num_scalar_prefetch=0,
            grid=(n_seq, B),                                     # seq leading -> megacore splits seq
            in_specs=[
                pl.BlockSpec((1, tm, H), lambda s, b: (b, s, 0)),   # x rows, full H
                pl.BlockSpec((1, 1, H), lambda s, b: (b, 0, 0)),    # shift
                pl.BlockSpec((1, 1, H), lambda s, b: (b, 0, 0)),    # 1 + scale
                pl.BlockSpec((H, O), lambda s, b: (0, 0)),          # W_lin^T (resident)
                pl.BlockSpec((1, O), lambda s, b: (0, 0)),          # bias (resident)
            ],
            out_specs=pl.BlockSpec((1, tm, O), lambda s, b: (b, s, 0)),
        ),
        compiler_params=pltpu.CompilerParams(
            dimension_semantics=("parallel", "parallel"),
            vmem_limit_bytes=vmem_limit,
        ),
    )(x, shift, scale1, w_lin_t, b_lin2)


# --------------------------------- reference ------------------------------------
def _reference(x, vec, w_ada, b_ada, w_lin, b_lin):
    if vec.ndim == 3:
        vec = vec[:, 0, :]
    v = vec.astype(jnp.float32)
    v = v * jax.nn.sigmoid(v)
    ss = v @ w_ada.astype(jnp.float32).T + b_ada.astype(jnp.float32)
    shift, scale = jnp.split(ss, 2, axis=-1)
    xf = x.astype(jnp.float32)
    mu = xf.mean(-1, keepdims=True)
    var = jnp.mean((xf - mu) ** 2, axis=-1, keepdims=True)
    xn = (xf - mu) / jnp.sqrt(var + EPS)
    mod = xn * (1.0 + scale[:, None, :]) + shift[:, None, :]
    y = mod @ w_lin.astype(jnp.float32).T + b_lin.astype(jnp.float32)
    return y.astype(x.dtype)


if __name__ == "__main__":
    key = jax.random.PRNGKey(0)
    kx, kv, k1, k2, k3, k4 = jax.random.split(key, 6)

    batch, seq, hidden = 2, 8, 128
    patch_size, out_channels = 2, 32
    out_dim = patch_size * patch_size * out_channels            # 128 -> lane-dense output

    x = jax.random.normal(kx, (batch, seq, hidden), dtype=jnp.float32)
    vec = jax.random.normal(kv, (batch, hidden), dtype=jnp.float32)
    w_ada = 0.02 * jax.random.normal(k1, (2 * hidden, hidden), dtype=jnp.float32)
    b_ada = 0.02 * jax.random.normal(k2, (2 * hidden,), dtype=jnp.float32)
    w_lin = 0.02 * jax.random.normal(k3, (out_dim, hidden), dtype=jnp.float32)
    b_lin = 0.02 * jax.random.normal(k4, (out_dim,), dtype=jnp.float32)

    out = last_layer_forward(x, vec, w_ada, b_ada, w_lin, b_lin)
    out = jax.block_until_ready(out)

    ref = _reference(x, vec, w_ada, b_ada, w_lin, b_lin)
    assert out.shape == (batch, seq, out_dim) and out.dtype == x.dtype
    # one-pass variance (E[x^2]-mu^2) differs from the two-pass reference by ~1e-6 rel.
    assert jnp.allclose(out, ref, atol=1e-4, rtol=1e-4), "mismatch vs reference"

    print("KERNEL_OK")
</pallas_src>

<mosaic_0001>
module attributes {stable_mosaic.version = 11 : i64} {
  func.func @_ada_mod_kernel(%arg0: i32, %arg1: memref<2x128xf32, #tpu.memory_space<vmem>>, %arg2: memref<256x128xf32, #tpu.memory_space<vmem>>, %arg3: memref<1x256xf32, #tpu.memory_space<vmem>>, %arg4: memref<2x256xf32, #tpu.memory_space<vmem>>) attributes {dimension_semantics = [#tpu.dimension_semantics<parallel>], iteration_bounds = array<i64: 1>, scalar_prefetch = 0 : i64, scratch_operands = 0 : i64, tpu.core_type = #tpu.core_type<tc>, window_params = [{pipeline_mode = #tpu.pipeline_mode<synchronous>, transform_indices = @transform_0, window_bounds = array<i64: 2, 128>}, {transform_indices = @transform_1, window_bounds = array<i64: 256, 128>}, {transform_indices = @transform_2, window_bounds = array<i64: 1, 256>}, {transform_indices = @transform_3, window_bounds = array<i64: 2, 256>}]} {
    %c0 = arith.constant 0 : index
    %c0_0 = arith.constant 0 : index
    %0 = vector.load %arg1[%c0, %c0_0] : memref<2x128xf32, #tpu.memory_space<vmem>>, vector<2x128xf32>
    %1 = arith.negf %0 : vector<2x128xf32>
    %2 = math.exp %1 : vector<2x128xf32>
    %cst = arith.constant 1.000000e+00 : f32
    %3 = vector.broadcast %cst : f32 to vector<2x128xf32>
    %4 = arith.addf %3, %2 : vector<2x128xf32>
    %5 = arith.divf %3, %4 : vector<2x128xf32>
    %6 = arith.mulf %0, %5 : vector<2x128xf32>
    %c0_1 = arith.constant 0 : index
    %c0_2 = arith.constant 0 : index
    %7 = vector.load %arg2[%c0_1, %c0_2] : memref<256x128xf32, #tpu.memory_space<vmem>>, vector<256x128xf32>
    %cst_3 = arith.constant dense<0.000000e+00> : vector<2x256xf32>
    %8 = tpu.matmul %6, %7, %cst_3 {dimension_numbers = #tpu.dot_dimension_numbers<[1], [1], [0], [0], [0, 0, 1, 0], [], []>} : vector<2x128xf32>, vector<256x128xf32>, vector<2x256xf32> -> vector<2x256xf32>
    %c0_4 = arith.constant 0 : index
    %c0_5 = arith.constant 0 : index
    %9 = vector.load %arg3[%c0_4, %c0_5] : memref<1x256xf32, #tpu.memory_space<vmem>>, vector<1x256xf32>
    %10 = vector.broadcast %9 : vector<1x256xf32> to vector<2x256xf32>
    %11 = arith.addf %8, %10 : vector<2x256xf32>
    %c0_6 = arith.constant 0 : index
    %c0_7 = arith.constant 0 : index
    %12 = vector.load %arg4[%c0_6, %c0_7] : memref<2x256xf32, #tpu.memory_space<vmem>>, vector<2x256xf32>
    tpu.vector_store %arg4[%c0_6, %c0_7], %11 {strides = array<i32>} : memref<2x256xf32, #tpu.memory_space<vmem>>, vector<2x256xf32>,
    return
  }
  func.func @transform_0(%arg0: i32) -> (i32, i32) {
    %c0_i32 = arith.constant 0 : i32
    %c0_i32_0 = arith.constant 0 : i32
    %c0_i32_1 = arith.constant 0 : i32
    return %c0_i32, %c0_i32_0 : i32, i32
  }
  func.func @transform_1(%arg0: i32) -> (i32, i32) {
    %c0_i32 = arith.constant 0 : i32
    %c0_i32_0 = arith.constant 0 : i32
    return %arg0, %c0_i32 : i32, i32
  }
  func.func @transform_2(%arg0: i32) -> (i32, i32) {
    %c0_i32 = arith.constant 0 : i32
    %c0_i32_0 = arith.constant 0 : i32
    return %c0_i32, %arg0 : i32, i32
  }
  func.func @transform_3(%arg0: i32) -> (i32, i32) {
    %c0_i32 = arith.constant 0 : i32
    %c0_i32_0 = arith.constant 0 : i32
    return %c0_i32, %arg0 : i32, i32
  }
}

</mosaic_0001>

<bundles_post_ra>
// kernel: tpu_custom_call.1
= control target key start
LH: loop header
LB: loop body
LE: loop exit
PB: predicated region body
PF: predicated region fallthrough
CT: control target
= control target key end

     0   :  { %8 = vsyncpa [#allocation3], 0  ;;  %s412_s0 = inlined_call_operand.hbm [shape: f32[2,128], index: 0, kind: input, shape index: {}]   ;;  %s413_s1 = inlined_call_operand.hbm [shape: f32[256,128], index: 1, kind: input, shape index: {}]   ;;  %s414_s2 = inlined_call_operand.vmem [shape: f32[1,256], index: 2, kind: input, shape index: {}]   ;;  %s415_s3 = inlined_call_operand.hbm [shape: f32[2,256], index: 3, kind: output, shape index: {}]  }
   0x1   :  { %9 = vsyncpa [#allocation6], 0 }
   0x2   :  { %10 = vsyncpa [#allocation4], 0  ;;  %s341_s12 = smov [#allocation2]   ;;  %s342_s14 = smov [#allocation5]  }
   0x3   :  { %s17_s13 = sshll.u32 %s341_s12, 4  ;;  %s26_s15 = sshll.u32 %s342_s14, 4  ;;  %s18_s13 = int_to_ptr.vmem [resolvable:$true] %s17_s13  ;;  %s366_s15 = int_to_ptr.vmem [resolvable:$true] %s26_s15 }
   0x4   :  { %s269_s18 = scalar_lea.hbm %s412_s0, 32 }
   0x5   :  { %p270_p0 = scmp.ne.s32.totalorder %s412_s0, %s269_s18  ;;  %p273_p1 = scmp.lt.u32.totalorder %s269_s18, %s412_s0 }
   0x7   :  { %p275_p2 = pnand %p273_p1, %p270_p0 }
   0x9   :  { %278 = shalt.err (!%p275_p2)
}
   0xa   :  { %s279_s23 = scalar_lea.vmem %s18_s13, 32  ;;  %p284_p4 = scmp.lt.s32.totalorder %s18_s13, %s18_s13 }
   0xb   :  { %p280_p3 = scmp.ne.s32.totalorder %s18_s13, %s279_s23  ;;  %p285_p5 = scmp.lt.s32.totalorder %s279_s23, %s279_s23 }
   0xd   :  { %p286_p6 = por %p285_p5, %p284_p4 }
   0xf   :  { %p287_p7 = pnand %p286_p6, %p280_p3 }
  0x11   :  { %290 = shalt.err (!%p287_p7)
}
  0x12   :  { %20 = dma.hbm_to_vmem [thread:$0]  %s412_s0, 32, %s18_s13, [#allocation3]  }
  0x13   :  { %s291_s28 = scalar_lea.hbm %s413_s1, 4096 }
  0x14   :  { %p292_p8 = scmp.ne.s32.totalorder %s413_s1, %s291_s28  ;;  %p295_p9 = scmp.lt.u32.totalorder %s291_s28, %s413_s1 }
  0x16   :  { %p297_p10 = pnand %p295_p9, %p292_p8 }
  0x18   :  { %300 = shalt.err (!%p297_p10)
}
  0x19   :  { %s301_s6 = scalar_lea.vmem %s366_s15, 4096  ;;  %p306_p12 = scmp.lt.s32.totalorder %s366_s15, %s366_s15 }
  0x1a   :  { %p302_p11 = scmp.ne.s32.totalorder %s366_s15, %s301_s6  ;;  %p307_p13 = scmp.lt.s32.totalorder %s301_s6, %s301_s6 }
  0x1c   :  { %p308_p0 = por %p307_p13, %p306_p12 }
  0x1e   :  { %p309_p1 = pnand %p308_p0, %p302_p11 }
  0x20   :  { %312 = shalt.err (!%p309_p1)
}
  0x21   :  { %s343_s0 = smov 128   ;;  %s344_s7 = smov 8  }
  0x22   :  { %32 = dma.hbm_to_vmem [thread:$0]  %s413_s1, 4096, %s366_s15, [#allocation6], %s343_s0, %s343_s0, %s344_s7  }
  0x23   :  { %335 = dma.done.wait [#allocation3], 32  }
  0x24   :  { %336 = vsyncadd [#allocation3], 4294967264 }
  0x25   :  { %337 = dma.done.wait [#allocation6], 4096  }
  0x26   :  { %338 = vsyncadd [#allocation6], 4294963200  ;;  %v65_v0 = vld [vmem:[#allocation5 + $0x80] sm:$0xff]  ;;  %v66_v1 = vld [vmem:[#allocation5 + $0x88] sm:$0xff]  ;;  %v83_v54 = vlaneseq  ;;  %s345_s11 = smov [#allocation7]  }
  0x27   :  { %v49_v2 = vld [vmem:[#allocation5] sm:$0xff]  ;;  %v228_v3 = vpack.c.bf16 %v66_v1, %v65_v0  ;;  %v50_v4 = vld [vmem:[#allocation5 + $0x8] sm:$0xff]  ;;  %v67_v5 = vld [vmem:[#allocation5 + $0x90] sm:$0xff]  ;;  %s182_s12 = sshll.u32 %s345_s11, 4  ;;  %s183_s12 = int_to_ptr.vmem [resolvable:$true] %s182_s12 }
  0x28   :  { %v68_v6 = vld [vmem:[#allocation5 + $0x98] sm:$0xff]  ;;  %v230_v7 = vpack.c.bf16 %v50_v4, %v49_v2  ;;  %v51_v9 = vld [vmem:[#allocation5 + $0x10] sm:$0xff]  ;;  %v69_v11 = vld [vmem:[#allocation5 + $0xa0] sm:$0xff]  ;;  %v84_v55 = vshrl.u32 %v83_v54, 7  ;;  %s313_s13 = scalar_lea.vmem %s183_s12, 64  ;;  %p318_p3 = scmp.lt.s32.totalorder %s183_s12, %s183_s12 }
  0x29   :  { %v232_v8 = vpack.c.bf16 %v68_v6, %v67_v5  ;;  %229 = vmatprep.subr.bf16.mxu0 %v228_v3  ;;  %v52_v10 = vld [vmem:[#allocation5 + $0x18] sm:$0xff]  ;;  %v70_v12 = vld [vmem:[#allocation5 + $0xa8] sm:$0xff]  ;;  %v53_v17 = vld [vmem:[#allocation5 + $0x20] sm:$0xff]  ;;  %p314_p2 = scmp.ne.s32.totalorder %s183_s12, %s313_s13  ;;  %p319_p4 = scmp.lt.s32.totalorder %s313_s13, %s313_s13 }
  0x2a   :  { %231 = vmatpush3.bf16.xpose.msra.mxu0 %v230_v7  ;;  %v234_v13 = vpack.c.bf16 %v52_v10, %v51_v9  ;;  %v236_v14 = vpack.c.bf16 %v70_v12, %v69_v11  ;;  %v41_v15 = vld [vmem:[#allocation2] sm:$0x3]  ;;  %v54_v18 = vld [vmem:[#allocation5 + $0x28] sm:$0xff]  ;;  %v71_v19 = vld [vmem:[#allocation5 + $0xb0] sm:$0xff]  ;;  %v85_v56 = vsub.s32 0, %v84_v55  ;;  %v89_v58 = vsub.s32 1, %v84_v55 }
  0x2b   :  { %233 = vmatprep.subr.bf16.mxu0 %v232_v8  ;;  %v192_v16 = vmul.f32 -1.442695, %v41_v15  ;;  %v72_v20 = vld [vmem:[#allocation5 + $0xb8] sm:$0xff]  ;;  %v238_v21 = vpack.c.bf16 %v54_v18, %v53_v17  ;;  %v55_v23 = vld [vmem:[#allocation5 + $0x30] sm:$0xff]  ;;  %v73_v25 = vld [vmem:[#allocation5 + $0xc0] sm:$0xff]  ;;  %p320_p5 = por %p319_p4, %p318_p3 }
  0x2c   :  { %v240_v22 = vpack.c.bf16 %v72_v20, %v71_v19  ;;  %v56_v24 = vld [vmem:[#allocation5 + $0x38] sm:$0xff]  ;;  %v74_v26 = vld [vmem:[#allocation5 + $0xc8] sm:$0xff]  ;;  %v57_v31 = vld [vmem:[#allocation5 + $0x40] sm:$0xff] }
  0x2d   :  { %265 = vpow2.f32 %v192_v16  ;;  %v242_v28 = vpack.c.bf16 %v56_v24, %v55_v23  ;;  %v244_v30 = vpack.c.bf16 %v74_v26, %v73_v25  ;;  %v58_v32 = vld [vmem:[#allocation5 + $0x48] sm:$0xff]  ;;  %v75_v33 = vld [vmem:[#allocation5 + $0xd0] sm:$0xff]  ;;  %v76_v34 = vld [vmem:[#allocation5 + $0xd8] sm:$0xff]  ;;  %p321_p6 = pnand %p320_p5, %p314_p2 }
  0x2e   :  { %v246_v35 = vpack.c.bf16 %v58_v32, %v57_v31  ;;  %v248_v36 = vpack.c.bf16 %v76_v34, %v75_v33  ;;  %v59_v38 = vld [vmem:[#allocation5 + $0x50] sm:$0xff]  ;;  %v60_v39 = vld [vmem:[#allocation5 + $0x58] sm:$0xff]  ;;  %v77_v41 = vld [vmem:[#allocation5 + $0xe0] sm:$0xff] }
  0x2f   :  { %v78_v42 = vld [vmem:[#allocation5 + $0xe8] sm:$0xff]  ;;  %v250_v43 = vpack.c.bf16 %v60_v39, %v59_v38  ;;  %v61_v45 = vld [vmem:[#allocation5 + $0x60] sm:$0xff]  ;;  %v79_v47 = vld [vmem:[#allocation5 + $0xf0] sm:$0xff] }
  0x30   :  { %v252_v44 = vpack.c.bf16 %v78_v42, %v77_v41  ;;  %v62_v46 = vld [vmem:[#allocation5 + $0x68] sm:$0xff]  ;;  %v80_v48 = vld [vmem:[#allocation5 + $0xf8] sm:$0xff]  ;;  %v63_v51 = vld [vmem:[#allocation5 + $0x70] sm:$0xff] }
  0x31   :  { %v254_v49 = vpack.c.bf16 %v62_v46, %v61_v45  ;;  %v256_v50 = vpack.c.bf16 %v80_v48, %v79_v47  ;;  %v64_v52 = vld [vmem:[#allocation5 + $0x78] sm:$0xff] }
  0x32   :  { %235 = vmatpush3.bf16.xpose.msra.mxu0 %v234_v13  ;;  %v258_v53 = vpack.c.bf16 %v64_v52, %v63_v51  ;;  %v81_v57 = vld [vmem:[%s414_s2] sm:$0x3] }
  0x33   :  { %237 = vmatprep.subr.bf16.mxu0 %v236_v14  ;;  %v86_v59 = vrot.slane %v81_v57, %v85_v56  ;;  %v90_v60 = vrot.slane %v81_v57, %v89_v58 }
  0x37   :  { %v266_v27 = vpop.eup %265 }
  0x38   :  { %v45_v29 = vadd.f32 1.0, %v266_v27 }
  0x3a   :  { %239 = vmatpush3.bf16.xpose.msra.mxu0 %v238_v21  ;;  %267 = vrcp.f32 %v45_v29 }
  0x3b   :  { %241 = vmatprep.subr.bf16.mxu0 %v240_v22 }
  0x42   :  { %243 = vmatpush3.bf16.xpose.msra.mxu0 %v242_v28 }
  0x43   :  { %245 = vmatprep.subr.bf16.mxu0 %v244_v30 }
  0x44   :  { %v268_v37 = vpop.eup %267 }
  0x45   :  { %v48_v40 = vmul.f32 %v268_v37, %v41_v15 }
  0x47   :  { %226 = vmatprep.mubr.f32.mxu0 %v48_v40 }
  0x4a   :  { %247 = vmatpush3.bf16.xpose.msra.mxu0 %v246_v35 }
  0x4b   :  { %249 = vmatprep.subr.bf16.mxu0 %v248_v36 }
  0x52   :  { %251 = vmatpush3.bf16.xpose.msra.mxu0 %v250_v43 }
  0x53   :  { %253 = vmatprep.subr.bf16.mxu0 %v252_v44 }
  0x5a   :  { %255 = vmatpush3.bf16.xpose.msra.mxu0 %v254_v49 }
  0x5b   :  { %257 = vmatprep.subr.bf16.mxu0 %v256_v50 }
  0x62   :  { %259 = vmatpush3.bf16.xpose.msra.mxu0 %v258_v53 }
  0x69   :  { %227 = vmatmul.mubr.f32.vlgmr.msra.gmra.mrb[0].mxu0 %v48_v40 }
 0x13c   :  { %v159_v61 = vpop.f32.mrb[0].mxu0 }
 0x13d   :  { %v160_v62 = vadd.f32 %v159_v61, %v86_v59  ;;  %v161_v63 = vpop.f32.mrb[1].mxu0 }
 0x13e   :  { %v162_v0 = vadd.f32 %v161_v63, %v90_v60 }
 0x140   :  { %v166_v1 = vcombine.low %v160_v62, %v162_v0 }
 0x142   :  { %193 = vst.sshfl [vmem:[#allocation7] sm:$0x33 pattern:$0x76325410] %v166_v1 }
 0x143   :  { %324 = shalt.err (!%p321_p6)
}
 0x144   :  { %s325_s15 = scalar_lea.hbm %s415_s3, 64 }
 0x145   :  { %p326_p7 = scmp.ne.s32.totalorder %s415_s3, %s325_s15  ;;  %p329_p8 = scmp.lt.u32.totalorder %s325_s15, %s415_s3 }
 0x147   :  { %p331_p9 = pnand %p329_p8, %p326_p7 }
 0x149   :  { %334 = shalt.err (!%p331_p9)
}
 0x14a   :  { %185 = dma.vmem_to_hbm [thread:$0]  %s183_s12, 64, %s415_s3, [#allocation4]  }
 0x14b   :  { %339 = dma.done.wait [#allocation4], 64  }
 0x14c   :  { %340 = vsyncadd [#allocation4], 4294967232 }
 0x14d   :  { %189 = vsyncpa [#allocation3], 1 }
 0x14e   :  { %190 = vsyncpa [#allocation6], 1 }
 0x14f   :  { %191 = vsyncpa [#allocation4], 1 }

</bundles_post_ra>
